<compile_context>
chip_gen: v7x
topology: tpu7x:2x2x1
jax: 0.10.0
libtpu: 0.0.40
codegen_flags: <defaults>
</compile_context>

<pallas_src>
import numpy as np
import jax
import jax.numpy as jnp
from jax import lax
from jax.experimental import pallas as pl
from jax.experimental.pallas import tpu as pltpu

GAMMA = 0.8        # step-size of the prior term (gamma in the module)
LAMBD = 1.0        # data-fidelity prox weight (lambd in the module)
MAX_ITER = 6
AVERAGE_LAST = True

COST_ROWS = 8      # cost slab rows (>= MAX_ITER); row `it` holds iteration it's cost
COST_LANES = 128   # one full vreg -> single unmasked store


def _make_fused_kernel(n_rows, n_lanes, max_iter, gamma, lambd, average_last):
    """Fused GD kernel for a (n_rows, n_lanes) = (N*C, H*W) layout."""
    assert max_iter <= COST_ROWS
    assert n_rows <= 8, "single-block design assumes n_rows fits one sublane group"
    assert n_lanes % 128 == 0, "lane axis must be a multiple of 128 for dense vst"

    def kernel(w_ref, b_ref, y_ref, x_ref, u_ref, cost_ref):
        wb = w_ref[...]        # (n_rows, n_rows) block-diagonal channel mix
        bias = b_ref[...]      # (n_rows, 1)
        y = y_ref[...]         # (n_rows, n_lanes)

        # ---- loop-invariant hoists (JAX does not CSE broadcast_in_dim) ----
        w_cols = [jnp.broadcast_to(wb[:, k:k + 1], (n_rows, n_lanes))
                  for k in range(n_rows)]
        bias_b = jnp.broadcast_to(bias, (n_rows, n_lanes))
        # Folded blend+prox constants: x <- a*x + b*restored + cy
        a_coef = (1.0 - gamma) / (1.0 + lambd)
        b_coef = gamma / (1.0 + lambd)
        cy = (lambd / (1.0 + lambd)) * y

        def channel_mix(x):
            # restored = W_big @ x + b_big as n_rows broadcast-FMAs on the VPU,
            # combined with a pairwise tree-sum (critical-path depth ~log2(n_rows)).
            parts = [w_cols[k] * x[k:k + 1, :] for k in range(n_rows)]
            parts[0] = parts[0] + bias_b          # fold bias into first partial
            while len(parts) > 1:
                nxt = [parts[i] + parts[i + 1] for i in range(0, len(parts) - 1, 2)]
                if len(parts) % 2 == 1:
                    nxt.append(parts[-1])
                parts = nxt
            return parts[0]

        row_ids = lax.broadcasted_iota(jnp.int32, (COST_ROWS, COST_LANES), 0)
        costs = jnp.zeros((COST_ROWS, COST_LANES), jnp.float32)

        # x_init is None, init_pinv=False -> x_0 = physics.A_adjoint(y) = y.
        x = y
        x_mean = y
        u = y
        avg_start = max_iter - max_iter // 2

        for it in range(max_iter):           # fully unrolled; state stays in vregs
            restored = channel_mix(x)        # model(physics(x)), physics = identity
            diff = restored - x
            ssq = jnp.sum(jnp.sum(diff * diff, axis=1, keepdims=True),
                          axis=0, keepdims=True)            # (1, 1) squared norm
            costs = jnp.where(row_ids == it, ssq, costs)    # sqrt done on host

            if it == max_iter - 1:
                # Only the final iteration's u is ever observed.
                u = (1.0 - gamma) * x + gamma * restored

            # Blend + L2 prox (identity physics), folded into 2 FMAs + 1 add.
            x = a_coef * x + b_coef * restored + cy

            if average_last and it >= avg_start:   # trailing-iterate averaging
                f = 1.0 / (it - max_iter + max_iter // 2 + 1)
                x_mean = (1.0 - f) * x_mean + f * x
                x = x_mean

        x_ref[...] = x
        u_ref[...] = u
        cost_ref[...] = costs

    return kernel


def _fused_forward_2d(w_big, b_big, y2d, *, max_iter=MAX_ITER):
    nr, nl = y2d.shape
    vmem = pl.BlockSpec(memory_space=pltpu.MemorySpace.VMEM)
    kernel = _make_fused_kernel(nr, nl, max_iter, GAMMA, LAMBD, AVERAGE_LAST)
    return pl.pallas_call(
        kernel,
        out_shape=(
            jax.ShapeDtypeStruct((nr, nl), jnp.float32),             # final x_k
            jax.ShapeDtypeStruct((nr, nl), jnp.float32),             # final u
            jax.ShapeDtypeStruct((COST_ROWS, COST_LANES), jnp.float32),
        ),
        in_specs=[vmem, vmem, vmem],
        out_specs=(vmem, vmem, vmem),
    )(w_big, b_big, y2d)


@jax.jit
def _forward_jit(y, w_big, b_big):
    N, C, H, W = y.shape
    # (N, C, H, W) -> (N*C, H*W): contiguous reshape (no transpose), fills all
    # 8 sublanes. Done ONCE, outside the iteration loop (which lives in-kernel).
    y2d = y.reshape(N * C, H * W).astype(jnp.float32)
    x2d, u2d, cost8 = _fused_forward_2d(w_big, b_big, y2d)
    x_out = x2d.reshape(N, C, H, W)
    u_out = u2d.reshape(N, C, H, W)
    return x_out, u_out, cost8[:MAX_ITER, 0]


# Host-side cache of the kron-expanded 1x1-conv params (static across calls);
# keeps kron/tile/astype out of the jitted graph and off the device entirely.
_PARAM_CACHE = {}


def _expanded_params(w, b, N):
    key = (id(w), id(b), int(N))
    if key not in _PARAM_CACHE:
        wf = np.asarray(w, dtype=np.float32)
        bf = np.asarray(b, dtype=np.float32)
        w_big = jnp.asarray(np.kron(np.eye(N, dtype=np.float32), wf))
        b_big = jnp.asarray(np.tile(bf, (N, 1)))
        _PARAM_CACHE[key] = (w_big, b_big)
    return _PARAM_CACHE[key]


def gradient_descent_forward(y, w, b):
    """Mirrors GradientDescentModel.forward(y, physics) with x_true=None,
    x_init=None, last_model=None, debug=False, return_all=False."""
    N = y.shape[0]
    w_big, b_big = _expanded_params(w, b, N)
    x_out, u_out, costs_sq = _forward_jit(y, w_big, b_big)
    # Single device->host transfer for the whole cost log; sqrt of 6 scalars on host.
    logs = {"cost": [float(c) for c in np.sqrt(np.asarray(costs_sq))]}
    # TODO(synk): psnr logging needs dinv.metric.cal_psnr and x_true; skipped.
    return x_out, u_out, logs


if __name__ == "__main__":
    key = jax.random.PRNGKey(0)
    N, C, H, W = 2, 4, 16, 16
    k1, k2, k3 = jax.random.split(key, 3)

    # Measurement y (input to forward); NCHW like PyTorch.
    y = jax.random.normal(k1, (N, C, H, W), dtype=jnp.float32)

    # Deterministic synthetic restoration-model parameters (1x1 conv):
    # near-identity channel mix keeps the iteration stable.
    w = (0.8 * jnp.eye(C, dtype=jnp.float32)
         + 0.02 * jax.random.normal(k2, (C, C), dtype=jnp.float32))
    b = 0.01 * jax.random.normal(k3, (C, 1), dtype=jnp.float32)

    x_out, u_out, logs = gradient_descent_forward(y, w, b)
    jax.block_until_ready((x_out, u_out))
    assert x_out.shape == (N, C, H, W) and u_out.shape == (N, C, H, W)
    assert len(logs["cost"]) == MAX_ITER
    assert all(np.isfinite(np.asarray(logs["cost"])))
    print("KERNEL_OK")
</pallas_src>

<mosaic_0001>
module attributes {stable_mosaic.version = 11 : i64} {
  func.func @kernel(%arg0: memref<8x8xf32, #tpu.memory_space<vmem>>, %arg1: memref<8x1xf32, #tpu.memory_space<vmem>>, %arg2: memref<8x256xf32, #tpu.memory_space<vmem>>, %arg3: memref<8x256xf32, #tpu.memory_space<vmem>>, %arg4: memref<8x256xf32, #tpu.memory_space<vmem>>, %arg5: memref<8x128xf32, #tpu.memory_space<vmem>>) attributes {dimension_semantics = [], scalar_prefetch = 0 : i64, scratch_operands = 0 : i64, tpu.core_type = #tpu.core_type<tc>} {
    %c0 = arith.constant 0 : index
    %c0_0 = arith.constant 0 : index
    %0 = vector.load %arg0[%c0, %c0_0] : memref<8x8xf32, #tpu.memory_space<vmem>>, vector<8x8xf32>
    %c0_1 = arith.constant 0 : index
    %c0_2 = arith.constant 0 : index
    %1 = vector.load %arg1[%c0_1, %c0_2] : memref<8x1xf32, #tpu.memory_space<vmem>>, vector<8x1xf32>
    %c0_3 = arith.constant 0 : index
    %c0_4 = arith.constant 0 : index
    %2 = vector.load %arg2[%c0_3, %c0_4] : memref<8x256xf32, #tpu.memory_space<vmem>>, vector<8x256xf32>
    %3 = vector.extract_strided_slice %0 {offsets = [0, 0], sizes = [8, 1], strides = [1, 1]} : vector<8x8xf32> to vector<8x1xf32>
    %4 = vector.shape_cast %3 : vector<8x1xf32> to vector<8x1xf32>
    %5 = vector.broadcast %4 : vector<8x1xf32> to vector<8x256xf32>
    %6 = vector.extract_strided_slice %0 {offsets = [0, 1], sizes = [8, 1], strides = [1, 1]} : vector<8x8xf32> to vector<8x1xf32>
    %7 = vector.shape_cast %6 : vector<8x1xf32> to vector<8x1xf32>
    %8 = vector.broadcast %7 : vector<8x1xf32> to vector<8x256xf32>
    %9 = vector.extract_strided_slice %0 {offsets = [0, 2], sizes = [8, 1], strides = [1, 1]} : vector<8x8xf32> to vector<8x1xf32>
    %10 = vector.shape_cast %9 : vector<8x1xf32> to vector<8x1xf32>
    %11 = vector.broadcast %10 : vector<8x1xf32> to vector<8x256xf32>
    %12 = vector.extract_strided_slice %0 {offsets = [0, 3], sizes = [8, 1], strides = [1, 1]} : vector<8x8xf32> to vector<8x1xf32>
    %13 = vector.shape_cast %12 : vector<8x1xf32> to vector<8x1xf32>
    %14 = vector.broadcast %13 : vector<8x1xf32> to vector<8x256xf32>
    %15 = vector.extract_strided_slice %0 {offsets = [0, 4], sizes = [8, 1], strides = [1, 1]} : vector<8x8xf32> to vector<8x1xf32>
    %16 = vector.shape_cast %15 : vector<8x1xf32> to vector<8x1xf32>
    %17 = vector.broadcast %16 : vector<8x1xf32> to vector<8x256xf32>
    %18 = vector.extract_strided_slice %0 {offsets = [0, 5], sizes = [8, 1], strides = [1, 1]} : vector<8x8xf32> to vector<8x1xf32>
    %19 = vector.shape_cast %18 : vector<8x1xf32> to vector<8x1xf32>
    %20 = vector.broadcast %19 : vector<8x1xf32> to vector<8x256xf32>
    %21 = vector.extract_strided_slice %0 {offsets = [0, 6], sizes = [8, 1], strides = [1, 1]} : vector<8x8xf32> to vector<8x1xf32>
    %22 = vector.shape_cast %21 : vector<8x1xf32> to vector<8x1xf32>
    %23 = vector.broadcast %22 : vector<8x1xf32> to vector<8x256xf32>
    %24 = vector.extract_strided_slice %0 {offsets = [0, 7], sizes = [8, 1], strides = [1, 1]} : vector<8x8xf32> to vector<8x1xf32>
    %25 = vector.shape_cast %24 : vector<8x1xf32> to vector<8x1xf32>
    %26 = vector.broadcast %25 : vector<8x1xf32> to vector<8x256xf32>
    %27 = vector.shape_cast %1 : vector<8x1xf32> to vector<8x1xf32>
    %28 = vector.broadcast %27 : vector<8x1xf32> to vector<8x256xf32>
    %cst = arith.constant 5.000000e-01 : f32
    %29 = vector.broadcast %cst : f32 to vector<8x256xf32>
    %30 = arith.mulf %29, %2 : vector<8x256xf32>
    %31 = tpu.iota {dimensions = array<i32: 0>} : vector<8x128xi32>
    %cst_5 = arith.constant 0.000000e+00 : f32
    %32 = vector.broadcast %cst_5 : f32 to vector<8x128xf32>
    %33 = vector.extract_strided_slice %2 {offsets = [0, 0], sizes = [1, 256], strides = [1, 1]} : vector<8x256xf32> to vector<1x256xf32>
    %34 = vector.broadcast %33 : vector<1x256xf32> to vector<8x256xf32>
    %35 = arith.mulf %5, %34 : vector<8x256xf32>
    %36 = vector.extract_strided_slice %2 {offsets = [1, 0], sizes = [1, 256], strides = [1, 1]} : vector<8x256xf32> to vector<1x256xf32>
    %37 = vector.broadcast %36 : vector<1x256xf32> to vector<8x256xf32>
    %38 = arith.mulf %8, %37 : vector<8x256xf32>
    %39 = vector.extract_strided_slice %2 {offsets = [2, 0], sizes = [1, 256], strides = [1, 1]} : vector<8x256xf32> to vector<1x256xf32>
    %40 = vector.broadcast %39 : vector<1x256xf32> to vector<8x256xf32>
    %41 = arith.mulf %11, %40 : vector<8x256xf32>
    %42 = vector.extract_strided_slice %2 {offsets = [3, 0], sizes = [1, 256], strides = [1, 1]} : vector<8x256xf32> to vector<1x256xf32>
    %43 = vector.broadcast %42 : vector<1x256xf32> to vector<8x256xf32>
    %44 = arith.mulf %14, %43 : vector<8x256xf32>
    %45 = vector.extract_strided_slice %2 {offsets = [4, 0], sizes = [1, 256], strides = [1, 1]} : vector<8x256xf32> to vector<1x256xf32>
    %46 = vector.broadcast %45 : vector<1x256xf32> to vector<8x256xf32>
    %47 = arith.mulf %17, %46 : vector<8x256xf32>
    %48 = vector.extract_strided_slice %2 {offsets = [5, 0], sizes = [1, 256], strides = [1, 1]} : vector<8x256xf32> to vector<1x256xf32>
    %49 = vector.broadcast %48 : vector<1x256xf32> to vector<8x256xf32>
    %50 = arith.mulf %20, %49 : vector<8x256xf32>
    %51 = vector.extract_strided_slice %2 {offsets = [6, 0], sizes = [1, 256], strides = [1, 1]} : vector<8x256xf32> to vector<1x256xf32>
    %52 = vector.broadcast %51 : vector<1x256xf32> to vector<8x256xf32>
    %53 = arith.mulf %23, %52 : vector<8x256xf32>
    %54 = vector.extract_strided_slice %2 {offsets = [7, 0], sizes = [1, 256], strides = [1, 1]} : vector<8x256xf32> to vector<1x256xf32>
    %55 = vector.broadcast %54 : vector<1x256xf32> to vector<8x256xf32>
    %56 = arith.mulf %26, %55 : vector<8x256xf32>
    %57 = arith.addf %35, %28 : vector<8x256xf32>
    %58 = arith.addf %57, %38 : vector<8x256xf32>
    %59 = arith.addf %41, %44 : vector<8x256xf32>
    %60 = arith.addf %47, %50 : vector<8x256xf32>
    %61 = arith.addf %53, %56 : vector<8x256xf32>
    %62 = arith.addf %58, %59 : vector<8x256xf32>
    %63 = arith.addf %60, %61 : vector<8x256xf32>
    %64 = arith.addf %62, %63 : vector<8x256xf32>
    %65 = arith.subf %64, %2 : vector<8x256xf32>
    %66 = arith.mulf %65, %65 : vector<8x256xf32>
    %cst_6 = arith.constant dense<0.000000e+00> : vector<8xf32>
    %67 = vector.multi_reduction <add>, %66, %cst_6 [1] : vector<8x256xf32> to vector<8xf32>
    %68 = vector.shape_cast %67 : vector<8xf32> to vector<8x1xf32>
    %cst_7 = arith.constant dense<0.000000e+00> : vector<1xf32>
    %69 = vector.multi_reduction <add>, %68, %cst_7 [0] : vector<8x1xf32> to vector<1xf32>
    %70 = vector.shape_cast %69 : vector<1xf32> to vector<1x1xf32>
    %c0_i32 = arith.constant 0 : i32
    %71 = vector.broadcast %c0_i32 : i32 to vector<8x128xi32>
    %72 = arith.cmpi eq, %31, %71 : vector<8x128xi32>
    %73 = vector.shape_cast %70 : vector<1x1xf32> to vector<1x1xf32>
    %74 = vector.broadcast %73 : vector<1x1xf32> to vector<8x128xf32>
    %75 = arith.select %72, %74, %32 : vector<8x128xi1>, vector<8x128xf32>
    %cst_8 = arith.constant 1.000000e-01 : f32
    %76 = vector.broadcast %cst_8 : f32 to vector<8x256xf32>
    %77 = arith.mulf %76, %2 : vector<8x256xf32>
    %cst_9 = arith.constant 4.000000e-01 : f32
    %78 = vector.broadcast %cst_9 : f32 to vector<8x256xf32>
    %79 = arith.mulf %78, %64 : vector<8x256xf32>
    %80 = arith.addf %77, %79 : vector<8x256xf32>
    %81 = arith.addf %80, %30 : vector<8x256xf32>
    %82 = vector.extract_strided_slice %81 {offsets = [0, 0], sizes = [1, 256], strides = [1, 1]} : vector<8x256xf32> to vector<1x256xf32>
    %83 = vector.broadcast %82 : vector<1x256xf32> to vector<8x256xf32>
    %84 = arith.mulf %5, %83 : vector<8x256xf32>
    %85 = vector.extract_strided_slice %81 {offsets = [1, 0], sizes = [1, 256], strides = [1, 1]} : vector<8x256xf32> to vector<1x256xf32>
    %86 = vector.broadcast %85 : vector<1x256xf32> to vector<8x256xf32>
    %87 = arith.mulf %8, %86 : vector<8x256xf32>
    %88 = vector.extract_strided_slice %81 {offsets = [2, 0], sizes = [1, 256], strides = [1, 1]} : vector<8x256xf32> to vector<1x256xf32>
    %89 = vector.broadcast %88 : vector<1x256xf32> to vector<8x256xf32>
    %90 = arith.mulf %11, %89 : vector<8x256xf32>
    %91 = vector.extract_strided_slice %81 {offsets = [3, 0], sizes = [1, 256], strides = [1, 1]} : vector<8x256xf32> to vector<1x256xf32>
    %92 = vector.broadcast %91 : vector<1x256xf32> to vector<8x256xf32>
    %93 = arith.mulf %14, %92 : vector<8x256xf32>
    %94 = vector.extract_strided_slice %81 {offsets = [4, 0], sizes = [1, 256], strides = [1, 1]} : vector<8x256xf32> to vector<1x256xf32>
    %95 = vector.broadcast %94 : vector<1x256xf32> to vector<8x256xf32>
    %96 = arith.mulf %17, %95 : vector<8x256xf32>
    %97 = vector.extract_strided_slice %81 {offsets = [5, 0], sizes = [1, 256], strides = [1, 1]} : vector<8x256xf32> to vector<1x256xf32>
    %98 = vector.broadcast %97 : vector<1x256xf32> to vector<8x256xf32>
    %99 = arith.mulf %20, %98 : vector<8x256xf32>
    %100 = vector.extract_strided_slice %81 {offsets = [6, 0], sizes = [1, 256], strides = [1, 1]} : vector<8x256xf32> to vector<1x256xf32>
    %101 = vector.broadcast %100 : vector<1x256xf32> to vector<8x256xf32>
    %102 = arith.mulf %23, %101 : vector<8x256xf32>
    %103 = vector.extract_strided_slice %81 {offsets = [7, 0], sizes = [1, 256], strides = [1, 1]} : vector<8x256xf32> to vector<1x256xf32>
    %104 = vector.broadcast %103 : vector<1x256xf32> to vector<8x256xf32>
    %105 = arith.mulf %26, %104 : vector<8x256xf32>
    %106 = arith.addf %84, %28 : vector<8x256xf32>
    %107 = arith.addf %106, %87 : vector<8x256xf32>
    %108 = arith.addf %90, %93 : vector<8x256xf32>
    %109 = arith.addf %96, %99 : vector<8x256xf32>
    %110 = arith.addf %102, %105 : vector<8x256xf32>
    %111 = arith.addf %107, %108 : vector<8x256xf32>
    %112 = arith.addf %109, %110 : vector<8x256xf32>
    %113 = arith.addf %111, %112 : vector<8x256xf32>
    %114 = arith.subf %113, %81 : vector<8x256xf32>
    %115 = arith.mulf %114, %114 : vector<8x256xf32>
    %cst_10 = arith.constant dense<0.000000e+00> : vector<8xf32>
    %116 = vector.multi_reduction <add>, %115, %cst_10 [1] : vector<8x256xf32> to vector<8xf32>
    %117 = vector.shape_cast %116 : vector<8xf32> to vector<8x1xf32>
    %cst_11 = arith.constant dense<0.000000e+00> : vector<1xf32>
    %118 = vector.multi_reduction <add>, %117, %cst_11 [0] : vector<8x1xf32> to vector<1xf32>
    %119 = vector.shape_cast %118 : vector<1xf32> to vector<1x1xf32>
    %c1_i32 = arith.constant 1 : i32
    %120 = vector.broadcast %c1_i32 : i32 to vector<8x128xi32>
    %121 = arith.cmpi eq, %31, %120 : vector<8x128xi32>
    %122 = vector.shape_cast %119 : vector<1x1xf32> to vector<1x1xf32>
    %123 = vector.broadcast %122 : vector<1x1xf32> to vector<8x128xf32>
    %124 = arith.select %121, %123, %75 : vector<8x128xi1>, vector<8x128xf32>
    %cst_12 = arith.constant 1.000000e-01 : f32
    %125 = vector.broadcast %cst_12 : f32 to vector<8x256xf32>
    %126 = arith.mulf %125, %81 : vector<8x256xf32>
    %cst_13 = arith.constant 4.000000e-01 : f32
    %127 = vector.broadcast %cst_13 : f32 to vector<8x256xf32>
    %128 = arith.mulf %127, %113 : vector<8x256xf32>
    %129 = arith.addf %126, %128 : vector<8x256xf32>
    %130 = arith.addf %129, %30 : vector<8x256xf32>
    %131 = vector.extract_strided_slice %130 {offsets = [0, 0], sizes = [1, 256], strides = [1, 1]} : vector<8x256xf32> to vector<1x256xf32>
    %132 = vector.broadcast %131 : vector<1x256xf32> to vector<8x256xf32>
    %133 = arith.mulf %5, %132 : vector<8x256xf32>
    %134 = vector.extract_strided_slice %130 {offsets = [1, 0], sizes = [1, 256], strides = [1, 1]} : vector<8x256xf32> to vector<1x256xf32>
    %135 = vector.broadcast %134 : vector<1x256xf32> to vector<8x256xf32>
    %136 = arith.mulf %8, %135 : vector<8x256xf32>
    %137 = vector.extract_strided_slice %130 {offsets = [2, 0], sizes = [1, 256], strides = [1, 1]} : vector<8x256xf32> to vector<1x256xf32>
    %138 = vector.broadcast %137 : vector<1x256xf32> to vector<8x256xf32>
    %139 = arith.mulf %11, %138 : vector<8x256xf32>
    %140 = vector.extract_strided_slice %130 {offsets = [3, 0], sizes = [1, 256], strides = [1, 1]} : vector<8x256xf32> to vector<1x256xf32>
    %141 = vector.broadcast %140 : vector<1x256xf32> to vector<8x256xf32>
    %142 = arith.mulf %14, %141 : vector<8x256xf32>
    %143 = vector.extract_strided_slice %130 {offsets = [4, 0], sizes = [1, 256], strides = [1, 1]} : vector<8x256xf32> to vector<1x256xf32>
    %144 = vector.broadcast %143 : vector<1x256xf32> to vector<8x256xf32>
    %145 = arith.mulf %17, %144 : vector<8x256xf32>
    %146 = vector.extract_strided_slice %130 {offsets = [5, 0], sizes = [1, 256], strides = [1, 1]} : vector<8x256xf32> to vector<1x256xf32>
    %147 = vector.broadcast %146 : vector<1x256xf32> to vector<8x256xf32>
    %148 = arith.mulf %20, %147 : vector<8x256xf32>
    %149 = vector.extract_strided_slice %130 {offsets = [6, 0], sizes = [1, 256], strides = [1, 1]} : vector<8x256xf32> to vector<1x256xf32>
    %150 = vector.broadcast %149 : vector<1x256xf32> to vector<8x256xf32>
    %151 = arith.mulf %23, %150 : vector<8x256xf32>
    %152 = vector.extract_strided_slice %130 {offsets = [7, 0], sizes = [1, 256], strides = [1, 1]} : vector<8x256xf32> to vector<1x256xf32>
    %153 = vector.broadcast %152 : vector<1x256xf32> to vector<8x256xf32>
    %154 = arith.mulf %26, %153 : vector<8x256xf32>
    %155 = arith.addf %133, %28 : vector<8x256xf32>
    %156 = arith.addf %155, %136 : vector<8x256xf32>
    %157 = arith.addf %139, %142 : vector<8x256xf32>
    %158 = arith.addf %145, %148 : vector<8x256xf32>
    %159 = arith.addf %151, %154 : vector<8x256xf32>
    %160 = arith.addf %156, %157 : vector<8x256xf32>
    %161 = arith.addf %158, %159 : vector<8x256xf32>
    %162 = arith.addf %160, %161 : vector<8x256xf32>
    %163 = arith.subf %162, %130 : vector<8x256xf32>
    %164 = arith.mulf %163, %163 : vector<8x256xf32>
    %cst_14 = arith.constant dense<0.000000e+00> : vector<8xf32>
    %165 = vector.multi_reduction <add>, %164, %cst_14 [1] : vector<8x256xf32> to vector<8xf32>
    %166 = vector.shape_cast %165 : vector<8xf32> to vector<8x1xf32>
    %cst_15 = arith.constant dense<0.000000e+00> : vector<1xf32>
    %167 = vector.multi_reduction <add>, %166, %cst_15 [0] : vector<8x1xf32> to vector<1xf32>
    %168 = vector.shape_cast %167 : vector<1xf32> to vector<1x1xf32>
    %c2_i32 = arith.constant 2 : i32
    %169 = vector.broadcast %c2_i32 : i32 to vector<8x128xi32>
    %170 = arith.cmpi eq, %31, %169 : vector<8x128xi32>
    %171 = vector.shape_cast %168 : vector<1x1xf32> to vector<1x1xf32>
    %172 = vector.broadcast %171 : vector<1x1xf32> to vector<8x128xf32>
    %173 = arith.select %170, %172, %124 : vector<8x128xi1>, vector<8x128xf32>
    %cst_16 = arith.constant 1.000000e-01 : f32
    %174 = vector.broadcast %cst_16 : f32 to vector<8x256xf32>
    %175 = arith.mulf %174, %130 : vector<8x256xf32>
    %cst_17 = arith.constant 4.000000e-01 : f32
    %176 = vector.broadcast %cst_17 : f32 to vector<8x256xf32>
    %177 = arith.mulf %176, %162 : vector<8x256xf32>
    %178 = arith.addf %175, %177 : vector<8x256xf32>
    %179 = arith.addf %178, %30 : vector<8x256xf32>
    %180 = vector.extract_strided_slice %179 {offsets = [0, 0], sizes = [1, 256], strides = [1, 1]} : vector<8x256xf32> to vector<1x256xf32>
    %181 = vector.broadcast %180 : vector<1x256xf32> to vector<8x256xf32>
    %182 = arith.mulf %5, %181 : vector<8x256xf32>
    %183 = vector.extract_strided_slice %179 {offsets = [1, 0], sizes = [1, 256], strides = [1, 1]} : vector<8x256xf32> to vector<1x256xf32>
    %184 = vector.broadcast %183 : vector<1x256xf32> to vector<8x256xf32>
    %185 = arith.mulf %8, %184 : vector<8x256xf32>
    %186 = vector.extract_strided_slice %179 {offsets = [2, 0], sizes = [1, 256], strides = [1, 1]} : vector<8x256xf32> to vector<1x256xf32>
    %187 = vector.broadcast %186 : vector<1x256xf32> to vector<8x256xf32>
    %188 = arith.mulf %11, %187 : vector<8x256xf32>
    %189 = vector.extract_strided_slice %179 {offsets = [3, 0], sizes = [1, 256], strides = [1, 1]} : vector<8x256xf32> to vector<1x256xf32>
    %190 = vector.broadcast %189 : vector<1x256xf32> to vector<8x256xf32>
    %191 = arith.mulf %14, %190 : vector<8x256xf32>
    %192 = vector.extract_strided_slice %179 {offsets = [4, 0], sizes = [1, 256], strides = [1, 1]} : vector<8x256xf32> to vector<1x256xf32>
    %193 = vector.broadcast %192 : vector<1x256xf32> to vector<8x256xf32>
    %194 = arith.mulf %17, %193 : vector<8x256xf32>
    %195 = vector.extract_strided_slice %179 {offsets = [5, 0], sizes = [1, 256], strides = [1, 1]} : vector<8x256xf32> to vector<1x256xf32>
    %196 = vector.broadcast %195 : vector<1x256xf32> to vector<8x256xf32>
    %197 = arith.mulf %20, %196 : vector<8x256xf32>
    %198 = vector.extract_strided_slice %179 {offsets = [6, 0], sizes = [1, 256], strides = [1, 1]} : vector<8x256xf32> to vector<1x256xf32>
    %199 = vector.broadcast %198 : vector<1x256xf32> to vector<8x256xf32>
    %200 = arith.mulf %23, %199 : vector<8x256xf32>
    %201 = vector.extract_strided_slice %179 {offsets = [7, 0], sizes = [1, 256], strides = [1, 1]} : vector<8x256xf32> to vector<1x256xf32>
    %202 = vector.broadcast %201 : vector<1x256xf32> to vector<8x256xf32>
    %203 = arith.mulf %26, %202 : vector<8x256xf32>
    %204 = arith.addf %182, %28 : vector<8x256xf32>
    %205 = arith.addf %204, %185 : vector<8x256xf32>
    %206 = arith.addf %188, %191 : vector<8x256xf32>
    %207 = arith.addf %194, %197 : vector<8x256xf32>
    %208 = arith.addf %200, %203 : vector<8x256xf32>
    %209 = arith.addf %205, %206 : vector<8x256xf32>
    %210 = arith.addf %207, %208 : vector<8x256xf32>
    %211 = arith.addf %209, %210 : vector<8x256xf32>
    %212 = arith.subf %211, %179 : vector<8x256xf32>
    %213 = arith.mulf %212, %212 : vector<8x256xf32>
    %cst_18 = arith.constant dense<0.000000e+00> : vector<8xf32>
    %214 = vector.multi_reduction <add>, %213, %cst_18 [1] : vector<8x256xf32> to vector<8xf32>
    %215 = vector.shape_cast %214 : vector<8xf32> to vector<8x1xf32>
    %cst_19 = arith.constant dense<0.000000e+00> : vector<1xf32>
    %216 = vector.multi_reduction <add>, %215, %cst_19 [0] : vector<8x1xf32> to vector<1xf32>
    %217 = vector.shape_cast %216 : vector<1xf32> to vector<1x1xf32>
    %c3_i32 = arith.constant 3 : i32
    %218 = vector.broadcast %c3_i32 : i32 to vector<8x128xi32>
    %219 = arith.cmpi eq, %31, %218 : vector<8x128xi32>
    %220 = vector.shape_cast %217 : vector<1x1xf32> to vector<1x1xf32>
    %221 = vector.broadcast %220 : vector<1x1xf32> to vector<8x128xf32>
    %222 = arith.select %219, %221, %173 : vector<8x128xi1>, vector<8x128xf32>
    %cst_20 = arith.constant 1.000000e-01 : f32
    %223 = vector.broadcast %cst_20 : f32 to vector<8x256xf32>
    %224 = arith.mulf %223, %179 : vector<8x256xf32>
    %cst_21 = arith.constant 4.000000e-01 : f32
    %225 = vector.broadcast %cst_21 : f32 to vector<8x256xf32>
    %226 = arith.mulf %225, %211 : vector<8x256xf32>
    %227 = arith.addf %224, %226 : vector<8x256xf32>
    %228 = arith.addf %227, %30 : vector<8x256xf32>
    %cst_22 = arith.constant 0.000000e+00 : f32
    %229 = vector.broadcast %cst_22 : f32 to vector<8x256xf32>
    %230 = arith.mulf %229, %2 : vector<8x256xf32>
    %cst_23 = arith.constant 1.000000e+00 : f32
    %231 = vector.broadcast %cst_23 : f32 to vector<8x256xf32>
    %232 = arith.mulf %231, %228 : vector<8x256xf32>
    %233 = arith.addf %230, %232 : vector<8x256xf32>
    %234 = vector.extract_strided_slice %233 {offsets = [0, 0], sizes = [1, 256], strides = [1, 1]} : vector<8x256xf32> to vector<1x256xf32>
    %235 = vector.broadcast %234 : vector<1x256xf32> to vector<8x256xf32>
    %236 = arith.mulf %5, %235 : vector<8x256xf32>
    %237 = vector.extract_strided_slice %233 {offsets = [1, 0], sizes = [1, 256], strides = [1, 1]} : vector<8x256xf32> to vector<1x256xf32>
    %238 = vector.broadcast %237 : vector<1x256xf32> to vector<8x256xf32>
    %239 = arith.mulf %8, %238 : vector<8x256xf32>
    %240 = vector.extract_strided_slice %233 {offsets = [2, 0], sizes = [1, 256], strides = [1, 1]} : vector<8x256xf32> to vector<1x256xf32>
    %241 = vector.broadcast %240 : vector<1x256xf32> to vector<8x256xf32>
    %242 = arith.mulf %11, %241 : vector<8x256xf32>
    %243 = vector.extract_strided_slice %233 {offsets = [3, 0], sizes = [1, 256], strides = [1, 1]} : vector<8x256xf32> to vector<1x256xf32>
    %244 = vector.broadcast %243 : vector<1x256xf32> to vector<8x256xf32>
    %245 = arith.mulf %14, %244 : vector<8x256xf32>
    %246 = vector.extract_strided_slice %233 {offsets = [4, 0], sizes = [1, 256], strides = [1, 1]} : vector<8x256xf32> to vector<1x256xf32>
    %247 = vector.broadcast %246 : vector<1x256xf32> to vector<8x256xf32>
    %248 = arith.mulf %17, %247 : vector<8x256xf32>
    %249 = vector.extract_strided_slice %233 {offsets = [5, 0], sizes = [1, 256], strides = [1, 1]} : vector<8x256xf32> to vector<1x256xf32>
    %250 = vector.broadcast %249 : vector<1x256xf32> to vector<8x256xf32>
    %251 = arith.mulf %20, %250 : vector<8x256xf32>
    %252 = vector.extract_strided_slice %233 {offsets = [6, 0], sizes = [1, 256], strides = [1, 1]} : vector<8x256xf32> to vector<1x256xf32>
    %253 = vector.broadcast %252 : vector<1x256xf32> to vector<8x256xf32>
    %254 = arith.mulf %23, %253 : vector<8x256xf32>
    %255 = vector.extract_strided_slice %233 {offsets = [7, 0], sizes = [1, 256], strides = [1, 1]} : vector<8x256xf32> to vector<1x256xf32>
    %256 = vector.broadcast %255 : vector<1x256xf32> to vector<8x256xf32>
    %257 = arith.mulf %26, %256 : vector<8x256xf32>
    %258 = arith.addf %236, %28 : vector<8x256xf32>
    %259 = arith.addf %258, %239 : vector<8x256xf32>
    %260 = arith.addf %242, %245 : vector<8x256xf32>
    %261 = arith.addf %248, %251 : vector<8x256xf32>
    %262 = arith.addf %254, %257 : vector<8x256xf32>
    %263 = arith.addf %259, %260 : vector<8x256xf32>
    %264 = arith.addf %261, %262 : vector<8x256xf32>
    %265 = arith.addf %263, %264 : vector<8x256xf32>
    %266 = arith.subf %265, %233 : vector<8x256xf32>
    %267 = arith.mulf %266, %266 : vector<8x256xf32>
    %cst_24 = arith.constant dense<0.000000e+00> : vector<8xf32>
    %268 = vector.multi_reduction <add>, %267, %cst_24 [1] : vector<8x256xf32> to vector<8xf32>
    %269 = vector.shape_cast %268 : vector<8xf32> to vector<8x1xf32>
    %cst_25 = arith.constant dense<0.000000e+00> : vector<1xf32>
    %270 = vector.multi_reduction <add>, %269, %cst_25 [0] : vector<8x1xf32> to vector<1xf32>
    %271 = vector.shape_cast %270 : vector<1xf32> to vector<1x1xf32>
    %c4_i32 = arith.constant 4 : i32
    %272 = vector.broadcast %c4_i32 : i32 to vector<8x128xi32>
    %273 = arith.cmpi eq, %31, %272 : vector<8x128xi32>
    %274 = vector.shape_cast %271 : vector<1x1xf32> to vector<1x1xf32>
    %275 = vector.broadcast %274 : vector<1x1xf32> to vector<8x128xf32>
    %276 = arith.select %273, %275, %222 : vector<8x128xi1>, vector<8x128xf32>
    %cst_26 = arith.constant 1.000000e-01 : f32
    %277 = vector.broadcast %cst_26 : f32 to vector<8x256xf32>
    %278 = arith.mulf %277, %233 : vector<8x256xf32>
    %cst_27 = arith.constant 4.000000e-01 : f32
    %279 = vector.broadcast %cst_27 : f32 to vector<8x256xf32>
    %280 = arith.mulf %279, %265 : vector<8x256xf32>
    %281 = arith.addf %278, %280 : vector<8x256xf32>
    %282 = arith.addf %281, %30 : vector<8x256xf32>
    %cst_28 = arith.constant 5.000000e-01 : f32
    %283 = vector.broadcast %cst_28 : f32 to vector<8x256xf32>
    %284 = arith.mulf %283, %233 : vector<8x256xf32>
    %cst_29 = arith.constant 5.000000e-01 : f32
    %285 = vector.broadcast %cst_29 : f32 to vector<8x256xf32>
    %286 = arith.mulf %285, %282 : vector<8x256xf32>
    %287 = arith.addf %284, %286 : vector<8x256xf32>
    %288 = vector.extract_strided_slice %287 {offsets = [0, 0], sizes = [1, 256], strides = [1, 1]} : vector<8x256xf32> to vector<1x256xf32>
    %289 = vector.broadcast %288 : vector<1x256xf32> to vector<8x256xf32>
    %290 = arith.mulf %5, %289 : vector<8x256xf32>
    %291 = vector.extract_strided_slice %287 {offsets = [1, 0], sizes = [1, 256], strides = [1, 1]} : vector<8x256xf32> to vector<1x256xf32>
    %292 = vector.broadcast %291 : vector<1x256xf32> to vector<8x256xf32>
    %293 = arith.mulf %8, %292 : vector<8x256xf32>
    %294 = vector.extract_strided_slice %287 {offsets = [2, 0], sizes = [1, 256], strides = [1, 1]} : vector<8x256xf32> to vector<1x256xf32>
    %295 = vector.broadcast %294 : vector<1x256xf32> to vector<8x256xf32>
    %296 = arith.mulf %11, %295 : vector<8x256xf32>
    %297 = vector.extract_strided_slice %287 {offsets = [3, 0], sizes = [1, 256], strides = [1, 1]} : vector<8x256xf32> to vector<1x256xf32>
    %298 = vector.broadcast %297 : vector<1x256xf32> to vector<8x256xf32>
    %299 = arith.mulf %14, %298 : vector<8x256xf32>
    %300 = vector.extract_strided_slice %287 {offsets = [4, 0], sizes = [1, 256], strides = [1, 1]} : vector<8x256xf32> to vector<1x256xf32>
    %301 = vector.broadcast %300 : vector<1x256xf32> to vector<8x256xf32>
    %302 = arith.mulf %17, %301 : vector<8x256xf32>
    %303 = vector.extract_strided_slice %287 {offsets = [5, 0], sizes = [1, 256], strides = [1, 1]} : vector<8x256xf32> to vector<1x256xf32>
    %304 = vector.broadcast %303 : vector<1x256xf32> to vector<8x256xf32>
    %305 = arith.mulf %20, %304 : vector<8x256xf32>
    %306 = vector.extract_strided_slice %287 {offsets = [6, 0], sizes = [1, 256], strides = [1, 1]} : vector<8x256xf32> to vector<1x256xf32>
    %307 = vector.broadcast %306 : vector<1x256xf32> to vector<8x256xf32>
    %308 = arith.mulf %23, %307 : vector<8x256xf32>
    %309 = vector.extract_strided_slice %287 {offsets = [7, 0], sizes = [1, 256], strides = [1, 1]} : vector<8x256xf32> to vector<1x256xf32>
    %310 = vector.broadcast %309 : vector<1x256xf32> to vector<8x256xf32>
    %311 = arith.mulf %26, %310 : vector<8x256xf32>
    %312 = arith.addf %290, %28 : vector<8x256xf32>
    %313 = arith.addf %312, %293 : vector<8x256xf32>
    %314 = arith.addf %296, %299 : vector<8x256xf32>
    %315 = arith.addf %302, %305 : vector<8x256xf32>
    %316 = arith.addf %308, %311 : vector<8x256xf32>
    %317 = arith.addf %313, %314 : vector<8x256xf32>
    %318 = arith.addf %315, %316 : vector<8x256xf32>
    %319 = arith.addf %317, %318 : vector<8x256xf32>
    %320 = arith.subf %319, %287 : vector<8x256xf32>
    %321 = arith.mulf %320, %320 : vector<8x256xf32>
    %cst_30 = arith.constant dense<0.000000e+00> : vector<8xf32>
    %322 = vector.multi_reduction <add>, %321, %cst_30 [1] : vector<8x256xf32> to vector<8xf32>
    %323 = vector.shape_cast %322 : vector<8xf32> to vector<8x1xf32>
    %cst_31 = arith.constant dense<0.000000e+00> : vector<1xf32>
    %324 = vector.multi_reduction <add>, %323, %cst_31 [0] : vector<8x1xf32> to vector<1xf32>
    %325 = vector.shape_cast %324 : vector<1xf32> to vector<1x1xf32>
    %c5_i32 = arith.constant 5 : i32
    %326 = vector.broadcast %c5_i32 : i32 to vector<8x128xi32>
    %327 = arith.cmpi eq, %31, %326 : vector<8x128xi32>
    %328 = vector.shape_cast %325 : vector<1x1xf32> to vector<1x1xf32>
    %329 = vector.broadcast %328 : vector<1x1xf32> to vector<8x128xf32>
    %330 = arith.select %327, %329, %276 : vector<8x128xi1>, vector<8x128xf32>
    %cst_32 = arith.constant 2.000000e-01 : f32
    %331 = vector.broadcast %cst_32 : f32 to vector<8x256xf32>
    %332 = arith.mulf %331, %287 : vector<8x256xf32>
    %cst_33 = arith.constant 8.000000e-01 : f32
    %333 = vector.broadcast %cst_33 : f32 to vector<8x256xf32>
    %334 = arith.mulf %333, %319 : vector<8x256xf32>
    %335 = arith.addf %332, %334 : vector<8x256xf32>
    %cst_34 = arith.constant 1.000000e-01 : f32
    %336 = vector.broadcast %cst_34 : f32 to vector<8x256xf32>
    %337 = arith.mulf %336, %287 : vector<8x256xf32>
    %cst_35 = arith.constant 4.000000e-01 : f32
    %338 = vector.broadcast %cst_35 : f32 to vector<8x256xf32>
    %339 = arith.mulf %338, %319 : vector<8x256xf32>
    %340 = arith.addf %337, %339 : vector<8x256xf32>
    %341 = arith.addf %340, %30 : vector<8x256xf32>
    %cst_36 = arith.constant 0.666666686 : f32
    %342 = vector.broadcast %cst_36 : f32 to vector<8x256xf32>
    %343 = arith.mulf %342, %287 : vector<8x256xf32>
    %cst_37 = arith.constant 0.333333343 : f32
    %344 = vector.broadcast %cst_37 : f32 to vector<8x256xf32>
    %345 = arith.mulf %344, %341 : vector<8x256xf32>
    %346 = arith.addf %343, %345 : vector<8x256xf32>
    %c0_38 = arith.constant 0 : index
    %c0_39 = arith.constant 0 : index
    %347 = vector.load %arg3[%c0_38, %c0_39] : memref<8x256xf32, #tpu.memory_space<vmem>>, vector<8x256xf32>
    tpu.vector_store %arg3[%c0_38, %c0_39], %346 {strides = array<i32>} : memref<8x256xf32, #tpu.memory_space<vmem>>, vector<8x256xf32>,
    %c0_40 = arith.constant 0 : index
    %c0_41 = arith.constant 0 : index
    %348 = vector.load %arg4[%c0_40, %c0_41] : memref<8x256xf32, #tpu.memory_space<vmem>>, vector<8x256xf32>
    tpu.vector_store %arg4[%c0_40, %c0_41], %335 {strides = array<i32>} : memref<8x256xf32, #tpu.memory_space<vmem>>, vector<8x256xf32>,
    %c0_42 = arith.constant 0 : index
    %c0_43 = arith.constant 0 : index
    %349 = vector.load %arg5[%c0_42, %c0_43] : memref<8x128xf32, #tpu.memory_space<vmem>>, vector<8x128xf32>
    tpu.vector_store %arg5[%c0_42, %c0_43], %330 {strides = array<i32>} : memref<8x128xf32, #tpu.memory_space<vmem>>, vector<8x128xf32>,
    return
  }
}

</mosaic_0001>

<bundles_post_ra>
// kernel: _forward_jit.1
= control target key start
LH: loop header
LB: loop body
LE: loop exit
PB: predicated region body
PF: predicated region fallthrough
CT: control target
= control target key end

     0   :  { %v832_v0 = vmov 2   ;;  %v833_v1 = vmov 1   ;;  %v834_v3 = vmov 3   ;;  %v835_v4 = vmov 5   ;;  %s1249_s0 = inlined_call_operand.vmem [shape: f32[8,8], index: 0, kind: input, shape index: {}]   ;;  %s1250_s1 = inlined_call_operand.vmem [shape: f32[8,1], index: 1, kind: input, shape index: {}]   ;;  %s1251_s2 = inlined_call_operand.vmem [shape: f32[8,256], index: 2, kind: input, shape index: {}]   ;;  %s1252_s4 = inlined_call_operand.vmem [shape: f32[8,256], index: 4, kind: output, shape index: {1}]   ;;  %s1253_s3 = inlined_call_operand.vmem [shape: f32[8,256], index: 3, kind: output, shape index: {0}]   ;;  %s1254_s5 = inlined_call_operand.vmem [shape: f32[8,128], index: 5, kind: output, shape index: {2}]  }
   0x1   :  { %825 = vset.pattern.permute.xlu1 %v832_v0  ;;  %824 = vset.pattern.permute.xlu0 %v833_v1  ;;  %v17_v2 = vld [vmem:[%s1249_s0] sm:$0xff]  ;;  %v836_v5 = vmov 4   ;;  %v837_v6 = vmov 0   ;;  %v838_v8 = vmov 6   ;;  %v839_v9 = vmov 7   ;;  %v897_v18 = vld [vmem:[%s1251_s2 + $0x8] sm:$0xff] }
   0x2   :  { %31 = vperm.xlu1 %825, %v17_v2   ;;  %27 = vperm.xlu0 %824, %v17_v2   ;;  %v18_v7 = vld [vmem:[%s1250_s1] sm:$0xff]  ;;  %v61_v10 = vlaneseq }
   0x3   :  { %v892_v17 = vld [vmem:[%s1251_s2] sm:$0xff] }
   0x4   :  { %v880_v13 = vshrl.u32 %v61_v10, 7 }
   0x6   :  { %826 = vset.pattern.permute.xlu1 %v834_v3  ;;  %828 = vset.pattern.permute.xlu0 %v835_v4  ;;  %v887_v16 = vsub.s32 0, %v880_v13  ;;  %v908_v23 = vsub.s32 1, %v880_v13  ;;  %v911_v24 = vsub.s32 3, %v880_v13  ;;  %v914_v25 = vsub.s32 4, %v880_v13 }
   0x7   :  { %35 = vperm.xlu1 %826, %v17_v2   ;;  %43 = vperm.xlu0 %828, %v17_v2   ;;  %v917_v26 = vsub.s32 5, %v880_v13  ;;  %v920_v27 = vsub.s32 2, %v880_v13  ;;  %v923_v28 = vsub.s32 6, %v880_v13  ;;  %v928_v31 = vsub.s32 7, %v880_v13 }
   0x8   :  { %v66_v19 = vrot.slane %v892_v17, %v887_v16  ;;  %v70_v20 = vrot.slane %v897_v18, %v887_v16  ;;  %v76_v33 = vrot.slane %v892_v17, %v908_v23  ;;  %v80_v34 = vrot.slane %v897_v18, %v908_v23 }
   0x9   :  { %v96_v35 = vrot.slane %v892_v17, %v911_v24  ;;  %v100_v36 = vrot.slane %v897_v18, %v911_v24  ;;  %v106_v38 = vrot.slane %v892_v17, %v914_v25  ;;  %v110_v39 = vrot.slane %v897_v18, %v914_v25 }
   0xa   :  { %v116_v40 = vrot.slane %v892_v17, %v917_v26  ;;  %v120_v41 = vrot.slane %v897_v18, %v917_v26  ;;  %v86_v42 = vrot.slane %v892_v17, %v920_v27  ;;  %v90_v43 = vrot.slane %v897_v18, %v920_v27 }
   0xb   :  { %827 = vset.pattern.permute.xlu1 %v836_v5  ;;  %829 = vset.pattern.permute.xlu0 %v837_v6  ;;  %v126_v44 = vrot.slane %v892_v17, %v923_v28  ;;  %v130_v45 = vrot.slane %v897_v18, %v923_v28  ;;  %v136_v46 = vrot.slane %v892_v17, %v928_v31  ;;  %vm172_vm0 = vcmp.eq.s32.totalorder %v880_v13, 0 }
   0xc   :  { %39 = vperm.xlu1 %827, %v17_v2   ;;  %23 = vperm.xlu0 %829, %v17_v2   ;;  %v140_v47 = vrot.slane %v897_v18, %v928_v31  ;;  %vm291_vm1 = vcmp.eq.s32.totalorder %v880_v13, 1  ;;  %vm410_vm2 = vcmp.eq.s32.totalorder %v880_v13, 2  ;;  %vm529_vm3 = vcmp.eq.s32.totalorder %v880_v13, 3 }
   0xd   :  { %vm652_vm4 = vcmp.eq.s32.totalorder %v880_v13, 4  ;;  %vm777_vm5 = vcmp.eq.s32.totalorder %v880_v13, 5 }
  0x10   :  { %830 = vset.pattern.permute.xlu1 %v838_v8  ;;  %56 = vperm.xlu0 %829, %v18_v7  }
  0x11   :  { %47 = vperm.xlu1 %830, %v17_v2  }
  0x15   :  { %831 = vset.pattern.permute.xlu1 %v839_v9 }
  0x16   :  { %51 = vperm.xlu1 %831, %v17_v2  }
  0x81   :  { %v876_v11 = vpop.permute.xlu1 %31  ;;  %v878_v12 = vpop.permute.xlu0 %27 }
  0x82   :  { %v81_v50 = vmul.f32 %v76_v33, %v878_v12  ;;  %v82_v51 = vmul.f32 %v80_v34, %v878_v12  ;;  %v91_v59 = vmul.f32 %v86_v42, %v876_v11  ;;  %v92_v60 = vmul.f32 %v90_v43, %v876_v11 }
  0x83   :  { %v174_v33 = vmul.f32 0.1, %v892_v17  ;;  %v175_v34 = vmul.f32 0.1, %v897_v18 }
  0x86   :  { %v882_v14 = vpop.permute.xlu1 %35  ;;  %v884_v15 = vpop.permute.xlu0 %43 }
  0x87   :  { %v101_v52 = vmul.f32 %v96_v35, %v882_v14  ;;  %v102_v53 = vmul.f32 %v100_v36, %v882_v14  ;;  %v121_v56 = vmul.f32 %v116_v40, %v884_v15  ;;  %v122_v57 = vmul.f32 %v120_v41, %v884_v15 }
  0x88   :  { %v983_v35 = vmul.f32 0.5, %v892_v17  ;;  %v986_v36 = vmul.f32 0.5, %v897_v18 }
  0x89   :  { %v147_v3 = vadd.f32 %v101_v52, %v91_v59  ;;  %v148_v4 = vadd.f32 %v102_v53, %v92_v60 }
  0x8b   :  { %v903_v21 = vpop.permute.xlu1 %39  ;;  %v905_v22 = vpop.permute.xlu0 %23 }
  0x8c   :  { %v71_v29 = vmul.f32 %v66_v19, %v905_v22  ;;  %v72_v30 = vmul.f32 %v70_v20, %v905_v22  ;;  %v111_v54 = vmul.f32 %v106_v38, %v903_v21  ;;  %v112_v55 = vmul.f32 %v110_v39, %v903_v21 }
  0x8e   :  { %v149_v5 = vadd.f32 %v121_v56, %v111_v54  ;;  %v150_v6 = vadd.f32 %v122_v57, %v112_v55 }
  0x8f   :  { %v930_v32 = vpop.permute.xlu0 %56 }
  0x90   :  { %v940_v37 = vpop.permute.xlu1 %47  ;;  %v143_v48 = vadd.f32 %v71_v29, %v930_v32  ;;  %v144_v49 = vadd.f32 %v72_v30, %v930_v32 }
  0x91   :  { %v131_v61 = vmul.f32 %v126_v44, %v940_v37  ;;  %v132_v62 = vmul.f32 %v130_v45, %v940_v37 }
  0x92   :  { %v145_v1 = vadd.f32 %v143_v48, %v81_v50  ;;  %v146_v2 = vadd.f32 %v144_v49, %v82_v51 }
  0x94   :  { %v153_v9 = vadd.f32 %v147_v3, %v145_v1  ;;  %v154_v10 = vadd.f32 %v148_v4, %v146_v2 }
  0x95   :  { %v972_v58 = vpop.permute.xlu1 %51 }
  0x96   :  { %v141_v63 = vmul.f32 %v136_v46, %v972_v58  ;;  %v142_v0 = vmul.f32 %v140_v47, %v972_v58 }
  0x98   :  { %v151_v7 = vadd.f32 %v141_v63, %v131_v61  ;;  %v152_v8 = vadd.f32 %v142_v0, %v132_v62 }
  0x9a   :  { %v155_v19 = vadd.f32 %v151_v7, %v149_v5  ;;  %v156_v20 = vadd.f32 %v152_v8, %v150_v6 }
  0x9c   :  { %v157_v29 = vadd.f32 %v155_v19, %v153_v9  ;;  %v158_v30 = vadd.f32 %v156_v20, %v154_v10 }
  0x9e   :  { %v159_v38 = vsub.f32 %v157_v29, %v892_v17  ;;  %v160_v39 = vsub.f32 %v158_v30, %v897_v18  ;;  %v176_v40 = vmul.f32 0.4, %v157_v29  ;;  %v177_v41 = vmul.f32 0.4, %v158_v30 }
  0xa0   :  { %v161_v42 = vmul.f32 %v159_v38, %v159_v38  ;;  %v162_v43 = vmul.f32 %v160_v39, %v160_v39  ;;  %v178_v44 = vadd.f32 %v176_v40, %v174_v33  ;;  %v179_v45 = vadd.f32 %v177_v41, %v175_v34 }
  0xa2   :  { %v163_v46 = vadd.f32 %v162_v43, %v161_v42  ;;  %v180_v47 = vadd.f32 %v178_v44, %v983_v35  ;;  %v181_v48 = vadd.f32 %v179_v45, %v986_v36 }
  0xa4   :  { %164 = vadd.xlane.f32.xlu1 %v163_v46  ;;  %v185_v49 = vrot.slane %v180_v47, %v887_v16  ;;  %v189_v50 = vrot.slane %v181_v48, %v887_v16  ;;  %v205_v51 = vrot.slane %v180_v47, %v920_v27  ;;  %v209_v52 = vrot.slane %v181_v48, %v920_v27 }
  0xa5   :  { %v215_v53 = vrot.slane %v180_v47, %v911_v24  ;;  %v219_v54 = vrot.slane %v181_v48, %v911_v24  ;;  %v195_v57 = vrot.slane %v180_v47, %v908_v23  ;;  %v199_v59 = vrot.slane %v181_v48, %v908_v23 }
  0xa6   :  { %v190_v55 = vmul.f32 %v185_v49, %v905_v22  ;;  %v191_v56 = vmul.f32 %v189_v50, %v905_v22  ;;  %v210_v60 = vmul.f32 %v205_v51, %v876_v11  ;;  %v211_v61 = vmul.f32 %v209_v52, %v876_v11 }
  0xa7   :  { %v220_v62 = vmul.f32 %v215_v53, %v882_v14  ;;  %v221_v63 = vmul.f32 %v219_v54, %v882_v14  ;;  %v225_v0 = vrot.slane %v180_v47, %v914_v25  ;;  %v229_v1 = vrot.slane %v181_v48, %v914_v25 }
  0xa8   :  { %v235_v2 = vrot.slane %v180_v47, %v917_v26  ;;  %v239_v3 = vrot.slane %v181_v48, %v917_v26  ;;  %v245_v4 = vrot.slane %v180_v47, %v923_v28  ;;  %v249_v5 = vrot.slane %v181_v48, %v923_v28 }
  0xa9   :  { %v255_v6 = vrot.slane %v180_v47, %v928_v31  ;;  %v259_v7 = vrot.slane %v181_v48, %v928_v31  ;;  %v230_v8 = vmul.f32 %v225_v0, %v903_v21  ;;  %v231_v9 = vmul.f32 %v229_v1, %v903_v21 }
  0xaa   :  { %v240_v10 = vmul.f32 %v235_v2, %v884_v15  ;;  %v241_v19 = vmul.f32 %v239_v3, %v884_v15  ;;  %v250_v20 = vmul.f32 %v245_v4, %v940_v37  ;;  %v251_v29 = vmul.f32 %v249_v5, %v940_v37 }
  0xab   :  { %v260_v30 = vmul.f32 %v255_v6, %v972_v58  ;;  %v261_v33 = vmul.f32 %v259_v7, %v972_v58  ;;  %v200_v34 = vmul.f32 %v195_v57, %v878_v12  ;;  %v201_v38 = vmul.f32 %v199_v59, %v878_v12 }
  0xac   :  { %v262_v39 = vadd.f32 %v190_v55, %v930_v32  ;;  %v263_v40 = vadd.f32 %v191_v56, %v930_v32  ;;  %v268_v41 = vadd.f32 %v240_v10, %v230_v8  ;;  %v269_v42 = vadd.f32 %v241_v19, %v231_v9 }
  0xad   :  { %v270_v43 = vadd.f32 %v260_v30, %v250_v20  ;;  %v271_v44 = vadd.f32 %v261_v33, %v251_v29  ;;  %v266_v49 = vadd.f32 %v220_v62, %v210_v60  ;;  %v267_v50 = vadd.f32 %v221_v63, %v211_v61 }
  0xae   :  { %v264_v45 = vadd.f32 %v262_v39, %v200_v34  ;;  %v265_v46 = vadd.f32 %v263_v40, %v201_v38  ;;  %v293_v1 = vmul.f32 0.1, %v180_v47  ;;  %v294_v59 = vmul.f32 0.1, %v181_v48 }
  0xaf   :  { %v274_v53 = vadd.f32 %v270_v43, %v268_v41  ;;  %v275_v54 = vadd.f32 %v271_v44, %v269_v42 }
  0xb0   :  { %v272_v51 = vadd.f32 %v266_v49, %v264_v45  ;;  %v273_v52 = vadd.f32 %v267_v50, %v265_v46 }
  0xb2   :  { %v276_v0 = vadd.f32 %v274_v53, %v272_v51  ;;  %v277_v57 = vadd.f32 %v275_v54, %v273_v52 }
  0xb4   :  { %v278_v2 = vsub.f32 %v276_v0, %v180_v47  ;;  %v279_v55 = vsub.f32 %v277_v57, %v181_v48  ;;  %v295_v3 = vmul.f32 0.4, %v276_v0  ;;  %v296_v56 = vmul.f32 0.4, %v277_v57 }
  0xb6   :  { %v280_v4 = vmul.f32 %v278_v2, %v278_v2  ;;  %v281_v5 = vmul.f32 %v279_v55, %v279_v55  ;;  %v297_v6 = vadd.f32 %v295_v3, %v293_v1  ;;  %v298_v7 = vadd.f32 %v296_v56, %v294_v59 }
  0xb8   :  { %v282_v8 = vadd.f32 %v281_v5, %v280_v4  ;;  %v299_v60 = vadd.f32 %v297_v6, %v983_v35  ;;  %v300_v61 = vadd.f32 %v298_v7, %v986_v36 }
  0xba   :  { %283 = vadd.xlane.f32.xlu0 %v282_v8  ;;  %v304_v62 = vrot.slane %v299_v60, %v887_v16  ;;  %v308_v63 = vrot.slane %v300_v61, %v887_v16  ;;  %v324_v9 = vrot.slane %v299_v60, %v920_v27  ;;  %v328_v47 = vrot.slane %v300_v61, %v920_v27 }
  0xbb   :  { %v334_v48 = vrot.slane %v299_v60, %v911_v24  ;;  %v338_v10 = vrot.slane %v300_v61, %v911_v24  ;;  %v314_v29 = vrot.slane %v299_v60, %v908_v23  ;;  %v318_v30 = vrot.slane %v300_v61, %v908_v23 }
  0xbc   :  { %v309_v19 = vmul.f32 %v304_v62, %v905_v22  ;;  %v310_v20 = vmul.f32 %v308_v63, %v905_v22  ;;  %v329_v33 = vmul.f32 %v324_v9, %v876_v11  ;;  %v330_v34 = vmul.f32 %v328_v47, %v876_v11 }
  0xbd   :  { %v339_v38 = vmul.f32 %v334_v48, %v882_v14  ;;  %v340_v39 = vmul.f32 %v338_v10, %v882_v14  ;;  %v344_v40 = vrot.slane %v299_v60, %v914_v25  ;;  %v348_v41 = vrot.slane %v300_v61, %v914_v25 }
  0xbe   :  { %v354_v42 = vrot.slane %v299_v60, %v917_v26  ;;  %v358_v43 = vrot.slane %v300_v61, %v917_v26  ;;  %v364_v44 = vrot.slane %v299_v60, %v923_v28  ;;  %v368_v45 = vrot.slane %v300_v61, %v923_v28 }
  0xbf   :  { %v374_v46 = vrot.slane %v299_v60, %v928_v31  ;;  %v378_v49 = vrot.slane %v300_v61, %v928_v31  ;;  %v349_v50 = vmul.f32 %v344_v40, %v903_v21  ;;  %v350_v51 = vmul.f32 %v348_v41, %v903_v21 }
  0xc0   :  { %v359_v52 = vmul.f32 %v354_v42, %v884_v15  ;;  %v360_v53 = vmul.f32 %v358_v43, %v884_v15  ;;  %v369_v54 = vmul.f32 %v364_v44, %v940_v37  ;;  %v370_v0 = vmul.f32 %v368_v45, %v940_v37 }
  0xc1   :  { %v379_v57 = vmul.f32 %v374_v46, %v972_v58  ;;  %v380_v1 = vmul.f32 %v378_v49, %v972_v58  ;;  %v319_v59 = vmul.f32 %v314_v29, %v878_v12  ;;  %v320_v2 = vmul.f32 %v318_v30, %v878_v12 }
  0xc2   :  { %v381_v55 = vadd.f32 %v309_v19, %v930_v32  ;;  %v382_v3 = vadd.f32 %v310_v20, %v930_v32  ;;  %v387_v56 = vadd.f32 %v359_v52, %v349_v50  ;;  %v388_v4 = vadd.f32 %v360_v53, %v350_v51 }
  0xc3   :  { %v389_v5 = vadd.f32 %v379_v57, %v369_v54  ;;  %v390_v6 = vadd.f32 %v380_v1, %v370_v0  ;;  %v385_v62 = vadd.f32 %v339_v38, %v329_v33  ;;  %v386_v63 = vadd.f32 %v340_v39, %v330_v34 }
  0xc4   :  { %v383_v7 = vadd.f32 %v381_v55, %v319_v59  ;;  %v384_v8 = vadd.f32 %v382_v3, %v320_v2  ;;  %v412_v41 = vmul.f32 0.1, %v299_v60  ;;  %v413_v30 = vmul.f32 0.1, %v300_v61 }
  0xc5   :  { %v393_v48 = vadd.f32 %v389_v5, %v387_v56  ;;  %v394_v10 = vadd.f32 %v390_v6, %v388_v4 }
  0xc6   :  { %v391_v9 = vadd.f32 %v385_v62, %v383_v7  ;;  %v392_v47 = vadd.f32 %v386_v63, %v384_v8 }
  0xc8   :  { %v395_v40 = vadd.f32 %v393_v48, %v391_v9  ;;  %v396_v29 = vadd.f32 %v394_v10, %v392_v47 }
  0xca   :  { %v397_v42 = vsub.f32 %v395_v40, %v299_v60  ;;  %v398_v19 = vsub.f32 %v396_v29, %v300_v61  ;;  %v414_v43 = vmul.f32 0.4, %v395_v40  ;;  %v415_v20 = vmul.f32 0.4, %v396_v29 }
  0xcc   :  { %v399_v44 = vmul.f32 %v397_v42, %v397_v42  ;;  %v400_v45 = vmul.f32 %v398_v19, %v398_v19  ;;  %v416_v46 = vadd.f32 %v414_v43, %v412_v41  ;;  %v417_v49 = vadd.f32 %v415_v20, %v413_v30 }
  0xce   :  { %v401_v50 = vadd.f32 %v400_v45, %v399_v44  ;;  %v418_v33 = vadd.f32 %v416_v46, %v983_v35  ;;  %v419_v34 = vadd.f32 %v417_v49, %v986_v36 }
  0xd0   :  { %402 = vadd.xlane.f32.xlu1 %v401_v50  ;;  %v423_v38 = vrot.slane %v418_v33, %v887_v16  ;;  %v427_v39 = vrot.slane %v419_v34, %v887_v16  ;;  %v443_v51 = vrot.slane %v418_v33, %v920_v27  ;;  %v447_v60 = vrot.slane %v419_v34, %v920_v27 }
  0xd1   :  { %v453_v61 = vrot.slane %v418_v33, %v911_v24  ;;  %v457_v52 = vrot.slane %v419_v34, %v911_v24  ;;  %v433_v0 = vrot.slane %v418_v33, %v908_v23  ;;  %v437_v57 = vrot.slane %v419_v34, %v908_v23 }
  0xd2   :  { %v428_v53 = vmul.f32 %v423_v38, %v905_v22  ;;  %v429_v54 = vmul.f32 %v427_v39, %v905_v22  ;;  %v448_v1 = vmul.f32 %v443_v51, %v876_v11  ;;  %v449_v59 = vmul.f32 %v447_v60, %v876_v11 }
  0xd3   :  { %v458_v2 = vmul.f32 %v453_v61, %v882_v14  ;;  %v459_v55 = vmul.f32 %v457_v52, %v882_v14  ;;  %v463_v3 = vrot.slane %v418_v33, %v914_v25  ;;  %v467_v56 = vrot.slane %v419_v34, %v914_v25 }
  0xd4   :  { %v473_v4 = vrot.slane %v418_v33, %v917_v26  ;;  %v477_v5 = vrot.slane %v419_v34, %v917_v26  ;;  %v483_v6 = vrot.slane %v418_v33, %v923_v28  ;;  %v487_v7 = vrot.slane %v419_v34, %v923_v28 }
  0xd5   :  { %v493_v8 = vrot.slane %v418_v33, %v928_v31  ;;  %v497_v62 = vrot.slane %v419_v34, %v928_v31  ;;  %v468_v63 = vmul.f32 %v463_v3, %v903_v21  ;;  %v469_v9 = vmul.f32 %v467_v56, %v903_v21 }
  0xd6   :  { %v478_v47 = vmul.f32 %v473_v4, %v884_v15  ;;  %v479_v48 = vmul.f32 %v477_v5, %v884_v15  ;;  %v488_v10 = vmul.f32 %v483_v6, %v940_v37  ;;  %v489_v40 = vmul.f32 %v487_v7, %v940_v37 }
  0xd7   :  { %v498_v29 = vmul.f32 %v493_v8, %v972_v58  ;;  %v499_v41 = vmul.f32 %v497_v62, %v972_v58  ;;  %v438_v30 = vmul.f32 %v433_v0, %v878_v12  ;;  %v439_v42 = vmul.f32 %v437_v57, %v878_v12 }
  0xd8   :  { %v500_v19 = vadd.f32 %v428_v53, %v930_v32  ;;  %v501_v43 = vadd.f32 %v429_v54, %v930_v32  ;;  %v506_v20 = vadd.f32 %v478_v47, %v468_v63  ;;  %v507_v44 = vadd.f32 %v479_v48, %v469_v9 }
  0xd9   :  { %v508_v45 = vadd.f32 %v498_v29, %v488_v10  ;;  %v509_v46 = vadd.f32 %v499_v41, %v489_v40  ;;  %v504_v38 = vadd.f32 %v458_v2, %v448_v1  ;;  %v505_v39 = vadd.f32 %v459_v55, %v449_v59 }
  0xda   :  { %v502_v49 = vadd.f32 %v500_v19, %v438_v30  ;;  %v503_v50 = vadd.f32 %v501_v43, %v439_v42  ;;  %v531_v56 = vmul.f32 0.1, %v418_v33  ;;  %v532_v57 = vmul.f32 0.1, %v419_v34 }
  0xdb   :  { %v512_v61 = vadd.f32 %v508_v45, %v506_v20  ;;  %v513_v52 = vadd.f32 %v509_v46, %v507_v44  ;;  %v539_v6 = vmul.f32 0.0, %v892_v17  ;;  %v540_v7 = vmul.f32 0.0, %v897_v18 }
  0xdc   :  { %v510_v51 = vadd.f32 %v504_v38, %v502_v49  ;;  %v511_v60 = vadd.f32 %v505_v39, %v503_v50 }
  0xde   :  { %v514_v3 = vadd.f32 %v512_v61, %v510_v51  ;;  %v515_v0 = vadd.f32 %v513_v52, %v511_v60 }
  0xe0   :  { %v516_v4 = vsub.f32 %v514_v3, %v418_v33  ;;  %v517_v53 = vsub.f32 %v515_v0, %v419_v34  ;;  %v533_v5 = vmul.f32 0.4, %v514_v3  ;;  %v534_v54 = vmul.f32 0.4, %v515_v0 }
  0xe2   :  { %v518_v8 = vmul.f32 %v516_v4, %v516_v4  ;;  %v519_v62 = vmul.f32 %v517_v53, %v517_v53  ;;  %v535_v1 = vadd.f32 %v533_v5, %v531_v56  ;;  %v536_v59 = vadd.f32 %v534_v54, %v532_v57 }
  0xe4   :  { %v520_v2 = vadd.f32 %v519_v62, %v518_v8  ;;  %v537_v55 = vadd.f32 %v535_v1, %v983_v35  ;;  %v538_v63 = vadd.f32 %v536_v59, %v986_v36 }
  0xe6   :  { %v1102_v9 = vadd.f32 %v539_v6, %v537_v55  ;;  %v1104_v47 = vadd.f32 %v540_v7, %v538_v63  ;;  %521 = vadd.xlane.f32.xlu0 %v520_v2 }
  0xe8   :  { %v546_v33 = vrot.slane %v1102_v9, %v887_v16  ;;  %v550_v17 = vrot.slane %v1104_v47, %v887_v16  ;;  %v566_v18 = vrot.slane %v1102_v9, %v920_v27  ;;  %v570_v34 = vrot.slane %v1104_v47, %v920_v27 }
  0xe9   :  { %v576_v48 = vrot.slane %v1102_v9, %v911_v24  ;;  %v580_v10 = vrot.slane %v1104_v47, %v911_v24  ;;  %v556_v41 = vrot.slane %v1102_v9, %v908_v23  ;;  %v560_v30 = vrot.slane %v1104_v47, %v908_v23 }
  0xea   :  { %v551_v40 = vmul.f32 %v546_v33, %v905_v22  ;;  %v552_v29 = vmul.f32 %v550_v17, %v905_v22  ;;  %v571_v42 = vmul.f32 %v566_v18, %v876_v11  ;;  %v572_v19 = vmul.f32 %v570_v34, %v876_v11 }
  0xeb   :  { %v581_v43 = vmul.f32 %v576_v48, %v882_v14  ;;  %v582_v20 = vmul.f32 %v580_v10, %v882_v14  ;;  %v586_v44 = vrot.slane %v1102_v9, %v914_v25  ;;  %v590_v45 = vrot.slane %v1104_v47, %v914_v25 }
  0xec   :  { %v596_v46 = vrot.slane %v1102_v9, %v917_v26  ;;  %v600_v49 = vrot.slane %v1104_v47, %v917_v26  ;;  %v606_v50 = vrot.slane %v1102_v9, %v923_v28  ;;  %v610_v38 = vrot.slane %v1104_v47, %v923_v28 }
  0xed   :  { %v616_v39 = vrot.slane %v1102_v9, %v928_v31  ;;  %v620_v51 = vrot.slane %v1104_v47, %v928_v31  ;;  %v591_v60 = vmul.f32 %v586_v44, %v903_v21  ;;  %v592_v61 = vmul.f32 %v590_v45, %v903_v21 }
  0xee   :  { %v601_v52 = vmul.f32 %v596_v46, %v884_v15  ;;  %v602_v3 = vmul.f32 %v600_v49, %v884_v15  ;;  %v611_v0 = vmul.f32 %v606_v50, %v940_v37  ;;  %v612_v56 = vmul.f32 %v610_v38, %v940_v37 }
  0xef   :  { %v621_v57 = vmul.f32 %v616_v39, %v972_v58  ;;  %v622_v4 = vmul.f32 %v620_v51, %v972_v58  ;;  %v561_v53 = vmul.f32 %v556_v41, %v878_v12  ;;  %v562_v5 = vmul.f32 %v560_v30, %v878_v12 }
  0xf0   :  { %v623_v54 = vadd.f32 %v551_v40, %v930_v32  ;;  %v624_v6 = vadd.f32 %v552_v29, %v930_v32  ;;  %v629_v7 = vadd.f32 %v601_v52, %v591_v60  ;;  %v630_v8 = vadd.f32 %v602_v3, %v592_v61 }
  0xf1   :  { %v631_v62 = vadd.f32 %v621_v57, %v611_v0  ;;  %v632_v1 = vadd.f32 %v622_v4, %v612_v56  ;;  %v627_v55 = vadd.f32 %v581_v43, %v571_v42  ;;  %v628_v63 = vadd.f32 %v582_v20, %v572_v19 }
  0xf2   :  { %v625_v59 = vadd.f32 %v623_v54, %v561_v53  ;;  %v626_v2 = vadd.f32 %v624_v6, %v562_v5  ;;  %v654_v41 = vmul.f32 0.1, %v1102_v9  ;;  %v655_v40 = vmul.f32 0.1, %v1104_v47 }
  0xf3   :  { %v635_v18 = vadd.f32 %v631_v62, %v629_v7  ;;  %v636_v34 = vadd.f32 %v632_v1, %v630_v8  ;;  %v662_v38 = vmul.f32 0.5, %v1102_v9  ;;  %v663_v39 = vmul.f32 0.5, %v1104_v47 }
  0xf4   :  { %v633_v33 = vadd.f32 %v627_v55, %v625_v59  ;;  %v634_v17 = vadd.f32 %v628_v63, %v626_v2 }
  0xf6   :  { %v637_v48 = vadd.f32 %v635_v18, %v633_v33  ;;  %v638_v10 = vadd.f32 %v636_v34, %v634_v17 }
  0xf8   :  { %v639_v29 = vsub.f32 %v637_v48, %v1102_v9  ;;  %v640_v30 = vsub.f32 %v638_v10, %v1104_v47  ;;  %v656_v44 = vmul.f32 0.4, %v637_v48  ;;  %v657_v45 = vmul.f32 0.4, %v638_v10 }
  0xfa   :  { %v641_v46 = vmul.f32 %v639_v29, %v639_v29  ;;  %v642_v49 = vmul.f32 %v640_v30, %v640_v30  ;;  %v658_v42 = vadd.f32 %v656_v44, %v654_v41  ;;  %v659_v19 = vadd.f32 %v657_v45, %v655_v40 }
  0xfc   :  { %v643_v43 = vadd.f32 %v642_v49, %v641_v46  ;;  %v660_v20 = vadd.f32 %v658_v42, %v983_v35  ;;  %v661_v50 = vadd.f32 %v659_v19, %v986_v36 }
  0xfe   :  { %v664_v51 = vmul.f32 0.5, %v660_v20  ;;  %v665_v60 = vmul.f32 0.5, %v661_v50  ;;  %644 = vadd.xlane.f32.xlu1 %v643_v43 }
 0x100   :  { %v1164_v61 = vadd.f32 %v664_v51, %v662_v38  ;;  %v1166_v52 = vadd.f32 %v665_v60, %v663_v39 }
 0x102   :  { %v671_v3 = vrot.slane %v1164_v61, %v887_v16  ;;  %v675_v0 = vrot.slane %v1166_v52, %v887_v16  ;;  %v691_v56 = vrot.slane %v1164_v61, %v920_v27  ;;  %v695_v9 = vrot.slane %v1166_v52, %v920_v27 }
 0x103   :  { %v701_v47 = vrot.slane %v1164_v61, %v911_v24  ;;  %v705_v57 = vrot.slane %v1166_v52, %v911_v24  ;;  %v681_v5 = vrot.slane %v1164_v61, %v908_v23  ;;  %v685_v16 = vrot.slane %v1166_v52, %v908_v23 }
 0x104   :  { %v676_v4 = vmul.f32 %v671_v3, %v905_v22  ;;  %v677_v53 = vmul.f32 %v675_v0, %v905_v22  ;;  %v696_v54 = vmul.f32 %v691_v56, %v876_v11  ;;  %v697_v27 = vmul.f32 %v695_v9, %v876_v11 }
 0x105   :  { %v706_v6 = vmul.f32 %v701_v47, %v882_v14  ;;  %v707_v7 = vmul.f32 %v705_v57, %v882_v14  ;;  %v711_v24 = vrot.slane %v1164_v61, %v914_v25  ;;  %v715_v22 = vrot.slane %v1166_v52, %v914_v25 }
 0x106   :  { %v721_v8 = vrot.slane %v1164_v61, %v917_v26  ;;  %v725_v23 = vrot.slane %v1166_v52, %v917_v26  ;;  %v731_v62 = vrot.slane %v1164_v61, %v923_v28  ;;  %v735_v11 = vrot.slane %v1166_v52, %v923_v28 }
 0x107   :  { %v741_v14 = vrot.slane %v1164_v61, %v928_v31  ;;  %v745_v1 = vrot.slane %v1166_v52, %v928_v31  ;;  %v716_v25 = vmul.f32 %v711_v24, %v903_v21  ;;  %v717_v59 = vmul.f32 %v715_v22, %v903_v21 }
 0x108   :  { %v726_v2 = vmul.f32 %v721_v8, %v884_v15  ;;  %v727_v26 = vmul.f32 %v725_v23, %v884_v15  ;;  %v736_v55 = vmul.f32 %v731_v62, %v940_v37  ;;  %v737_v63 = vmul.f32 %v735_v11, %v940_v37 }
 0x109   :  { %v746_v28 = vmul.f32 %v741_v14, %v972_v58  ;;  %v747_v33 = vmul.f32 %v745_v1, %v972_v58  ;;  %v686_v17 = vmul.f32 %v681_v5, %v878_v12  ;;  %v687_v31 = vmul.f32 %v685_v16, %v878_v12 }
 0x10a   :  { %v748_v18 = vadd.f32 %v676_v4, %v930_v32  ;;  %v749_v21 = vadd.f32 %v677_v53, %v930_v32  ;;  %v754_v34 = vadd.f32 %v726_v2, %v716_v25  ;;  %v755_v48 = vadd.f32 %v727_v26, %v717_v59 }
 0x10b   :  { %v756_v10 = vadd.f32 %v746_v28, %v736_v55  ;;  %v757_v15 = vadd.f32 %v747_v33, %v737_v63  ;;  %v752_v29 = vadd.f32 %v706_v6, %v696_v54  ;;  %v753_v37 = vadd.f32 %v707_v7, %v697_v27 }
 0x10c   :  { %v750_v41 = vadd.f32 %v748_v18, %v686_v17  ;;  %v751_v40 = vadd.f32 %v749_v21, %v687_v31  ;;  %v779_v12 = vmul.f32 0.2, %v1164_v61  ;;  %v780_v42 = vmul.f32 0.2, %v1166_v52 }
 0x10d   :  { %v760_v45 = vadd.f32 %v756_v10, %v754_v34  ;;  %v761_v58 = vadd.f32 %v757_v15, %v755_v48  ;;  %v785_v32 = vmul.f32 0.1, %v1164_v61  ;;  %v786_v38 = vmul.f32 0.1, %v1166_v52 }
 0x10e   :  { %v758_v30 = vadd.f32 %v752_v29, %v750_v41  ;;  %v759_v44 = vadd.f32 %v753_v37, %v751_v40  ;;  %v793_v5 = vmul.f32 0.6666667, %v1164_v61  ;;  %v794_v16 = vmul.f32 0.6666667, %v1166_v52 }
 0x110   :  { %v762_v46 = vadd.f32 %v760_v45, %v758_v30  ;;  %v763_v49 = vadd.f32 %v761_v58, %v759_v44 }
 0x112   :  { %v764_v19 = vsub.f32 %v762_v46, %v1164_v61  ;;  %v765_v43 = vsub.f32 %v763_v49, %v1166_v52  ;;  %v781_v20 = vmul.f32 0.8, %v762_v46  ;;  %v782_v50 = vmul.f32 0.8, %v763_v49 }
 0x113   :  { %v787_v39 = vmul.f32 0.4, %v762_v46  ;;  %v788_v51 = vmul.f32 0.4, %v763_v49 }
 0x114   :  { %v766_v60 = vmul.f32 %v764_v19, %v764_v19  ;;  %v767_v3 = vmul.f32 %v765_v43, %v765_v43  ;;  %v783_v0 = vadd.f32 %v781_v20, %v779_v12  ;;  %v784_v56 = vadd.f32 %v782_v50, %v780_v42 }
 0x115   :  { %v789_v9 = vadd.f32 %v787_v39, %v785_v32  ;;  %v790_v47 = vadd.f32 %v788_v51, %v786_v38 }
 0x116   :  { %v768_v57 = vadd.f32 %v767_v3, %v766_v60  ;;  %801 = vst [vmem:[%s1252_s4] sm:$0xff] %v783_v0  ;;  %802 = vst [vmem:[%s1252_s4 + $0x8] sm:$0xff] %v784_v56 }
 0x117   :  { %v791_v4 = vadd.f32 %v789_v9, %v983_v35  ;;  %v792_v53 = vadd.f32 %v790_v47, %v986_v36 }
 0x118   :  { %769 = vadd.xlane.f32.xlu0 %v768_v57 }
 0x119   :  { %v795_v54 = vmul.f32 0.33333334, %v791_v4  ;;  %v796_v27 = vmul.f32 0.33333334, %v792_v53 }
 0x11b   :  { %v797_v6 = vadd.f32 %v795_v54, %v793_v5  ;;  %v798_v7 = vadd.f32 %v796_v27, %v794_v16 }
 0x11d   :  { %799 = vst [vmem:[%s1253_s3] sm:$0xff] %v797_v6  ;;  %800 = vst [vmem:[%s1253_s3 + $0x8] sm:$0xff] %v798_v7 }
 0x131   :  { %v165_v35 = vpop.xlane.xlu1 %164 }
 0x132   :  { %v166_v22 = vrot.slane %v165_v35, 4 }
 0x134   :  { %v167_v11 = vadd.f32 %v166_v22, %v165_v35 }
 0x136   :  { %v168_v2 = vrot.slane %v167_v11, 2 }
 0x138   :  { %v169_v33 = vadd.f32 %v168_v2, %v167_v11 }
 0x13a   :  { %v170_v34 = vrot.slane %v169_v33, 1 }
 0x13c   :  { %v171_v30 = vadd.f32 %v170_v34, %v169_v33 }
 0x13e   :  { %v173_v42 = vsel %vm172_vm0, %v171_v30, 0.0 }
 0x147   :  { %v284_v24 = vpop.xlane.xlu0 %283 }
 0x148   :  { %v285_v8 = vrot.slane %v284_v24, 4 }
 0x14a   :  { %v286_v1 = vadd.f32 %v285_v8, %v284_v24 }
 0x14c   :  { %v287_v55 = vrot.slane %v286_v1, 2 }
 0x14e   :  { %v288_v31 = vadd.f32 %v287_v55, %v286_v1 }
 0x150   :  { %v289_v15 = vrot.slane %v288_v31, 1 }
 0x152   :  { %v290_v45 = vadd.f32 %v289_v15, %v288_v31 }
 0x154   :  { %v292_v19 = vsel %vm291_vm1, %v290_v45, %v173_v42 }
 0x15d   :  { %v403_v36 = vpop.xlane.xlu1 %402 }
 0x15e   :  { %v404_v52 = vrot.slane %v403_v36, 4 }
 0x160   :  { %v405_v25 = vadd.f32 %v404_v52, %v403_v36 }
 0x162   :  { %v406_v63 = vrot.slane %v405_v25, 2 }
 0x164   :  { %v407_v18 = vadd.f32 %v406_v63, %v405_v25 }
 0x166   :  { %v408_v40 = vrot.slane %v407_v18, 1 }
 0x168   :  { %v409_v46 = vadd.f32 %v408_v40, %v407_v18 }
 0x16a   :  { %v411_v20 = vsel %vm410_vm2, %v409_v46, %v292_v19 }
 0x173   :  { %v522_v61 = vpop.xlane.xlu0 %521 }
 0x174   :  { %v523_v62 = vrot.slane %v522_v61, 4 }
 0x176   :  { %v524_v59 = vadd.f32 %v523_v62, %v522_v61 }
 0x178   :  { %v525_v28 = vrot.slane %v524_v59, 2 }
 0x17a   :  { %v526_v21 = vadd.f32 %v525_v28, %v524_v59 }
 0x17c   :  { %v527_v29 = vrot.slane %v526_v21, 1 }
 0x17e   :  { %v528_v49 = vadd.f32 %v527_v29, %v526_v21 }
 0x180   :  { %v530_v50 = vsel %vm529_vm3, %v528_v49, %v411_v20 }
 0x18b   :  { %v645_v23 = vpop.xlane.xlu1 %644 }
 0x18c   :  { %v646_v14 = vrot.slane %v645_v23, 4 }
 0x18e   :  { %v647_v26 = vadd.f32 %v646_v14, %v645_v23 }
 0x190   :  { %v648_v17 = vrot.slane %v647_v26, 2 }
 0x192   :  { %v649_v48 = vadd.f32 %v648_v17, %v647_v26 }
 0x194   :  { %v650_v44 = vrot.slane %v649_v48, 1 }
 0x196   :  { %v651_v32 = vadd.f32 %v650_v44, %v649_v48 }
 0x198   :  { %v653_v39 = vsel %vm652_vm4, %v651_v32, %v530_v50 }
 0x1a5   :  { %v770_v10 = vpop.xlane.xlu0 %769 }
 0x1a6   :  { %v771_v41 = vrot.slane %v770_v10, 4 }
 0x1a8   :  { %v772_v37 = vadd.f32 %v771_v41, %v770_v10 }
 0x1aa   :  { %v773_v58 = vrot.slane %v772_v37, 2 }
 0x1ac   :  { %v774_v12 = vadd.f32 %v773_v58, %v772_v37 }
 0x1ae   :  { %v775_v43 = vrot.slane %v774_v12, 1 }
 0x1b0   :  { %v776_v38 = vadd.f32 %v775_v43, %v774_v12 }
 0x1b2   :  { %v778_v51 = vsel %vm777_vm5, %v776_v38, %v653_v39 }
 0x1b3   :  { %803 = vst [vmem:[%s1254_s5] sm:$0xff] %v778_v51 }

</bundles_post_ra>
